<compile_context>
chip_gen: v7x
topology: tpu7x:2x2x1
jax: 0.10.0
libtpu: 0.0.40
codegen_flags: <defaults>
</compile_context>

<pallas_src>
import functools

import jax
import jax.numpy as jnp
from jax.experimental import pallas as pl
from jax.experimental.pallas import tpu as pltpu


def _loss_kernel(labels_ref,   # SMEM int32 [B]      (scalar prefetch)
                 x_ref,        # VMEM bf16  [B, tD]
                 wb_ref,       # VMEM bf16  [tD, 2F]  = [W_feat | W_feat - W_tgt]
                 bb_ref,       # VMEM f32   [1, 2F]   = [b_feat | b_feat - b_tgt]
                 wcp_ref,      # VMEM f32   [2F, K]   classifier W zero-padded over diff half
                 bc_ref,       # VMEM f32   [1, K]
                 lw_ref,       # SMEM f32   [2]       loss weights
                 out_ref,      # SMEM f32   [3]       [feat_loss, target_loss, total]
                 acc_ref,      # VMEM f32   [B, 2F]   scratch accumulator
                 *, feat_dim, num_classes, batch):
    k = pl.program_id(0)

    @pl.when(k == 0)
    def _():
        acc_ref[...] = jnp.zeros_like(acc_ref)

    # Fused student / (student - teacher) projection: one bf16 MXU pass per
    # D-tile, accumulated in f32.
    acc_ref[...] += jnp.dot(x_ref[...], wb_ref[...],
                            preferred_element_type=jnp.float32)

    @pl.when(k == pl.num_programs(0) - 1)
    def _():
        fused = acc_ref[...] + bb_ref[...]          # [B, 2F] = [feat | feat - tfeat]

        # feature_regression_criteria == nn.MSELoss(): mean over all B*F elements.
        is_diff = jax.lax.broadcasted_iota(jnp.int32, fused.shape, 1) >= feat_dim
        d = jnp.where(is_diff, fused, 0.0)
        feat_loss = jnp.sum(d * d) / (batch * feat_dim)

        # Classifier logits (W_cls zero-padded over the diff half, so no slicing).
        logit = jnp.dot(fused, wcp_ref[...],
                        preferred_element_type=jnp.float32) + bc_ref[...]

        # target_criteria == nn.CrossEntropyLoss(): mean over batch, hard labels.
        m = jnp.max(logit, axis=-1, keepdims=True)
        lse = jnp.log(jnp.sum(jnp.exp(logit - m), axis=-1, keepdims=True)) + m
        logp = logit - lse

        col = jax.lax.broadcasted_iota(jnp.int32, (1, num_classes), 1)
        ce = jnp.float32(0.0)
        for b in range(batch):                      # batch is small & static
            lbl = labels_ref[b]
            ce = ce - jnp.sum(jnp.where(col == lbl, logp[b:b + 1, :], 0.0))
        tgt_loss = ce / batch

        # losses @ weights
        total = feat_loss * lw_ref[0] + tgt_loss * lw_ref[1]
        out_ref[0] = feat_loss
        out_ref[1] = tgt_loss
        out_ref[2] = total


def feature_regression_criteria_forward(x_nchw, params, target_labels, weights):
    """Flatten NCHW input (torch .view(B, -1)) and run the fused Pallas loss kernel."""
    B = x_nchw.shape[0]
    x_flat = x_nchw.reshape(B, -1)
    D = x_flat.shape[1]

    W_feat, b_feat, W_tgt, b_tgt, W_cls, b_cls = params
    F = W_feat.shape[1]
    K = W_cls.shape[1]

    # Frozen teacher folded into a diff projection and fused with the student:
    # one [D, 2F] matmul yields [feat | feat - tfeat].
    W_both = jnp.concatenate([W_feat, W_feat - W_tgt], axis=1)        # [D, 2F]
    b_both = jnp.concatenate([b_feat, b_feat - b_tgt], axis=1)        # [1, 2F]

    # Classifier weights zero-padded over the diff half of the fused activation.
    W_cls_pad = jnp.concatenate(
        [W_cls, jnp.zeros((F, K), dtype=W_cls.dtype)], axis=0)        # [2F, K]

    # bf16 MXU inputs, f32 accumulation (biggest win on v5e; halves weight HBM bytes).
    x_bf16 = x_flat.astype(jnp.bfloat16)
    W_both_bf16 = W_both.astype(jnp.bfloat16)

    # D-axis reduction grid: pipelined DMA, bounded VMEM working set for large D.
    tD = 512 if D % 512 == 0 else D
    n_k = pl.cdiv(D, tD)

    labels = target_labels.astype(jnp.int32)                          # [B]  int32 (SMEM)
    lw = jnp.asarray(weights, dtype=jnp.float32).reshape(-1)          # [2]  f32   (SMEM)

    kernel = functools.partial(_loss_kernel, feat_dim=F, num_classes=K, batch=B)

    out = pl.pallas_call(
        kernel,
        out_shape=jax.ShapeDtypeStruct((3,), jnp.float32),
        grid_spec=pltpu.PrefetchScalarGridSpec(
            num_scalar_prefetch=1,
            grid=(n_k,),
            in_specs=[
                pl.BlockSpec((B, tD), lambda k, lbl: (0, k)),            # x tile
                pl.BlockSpec((tD, 2 * F), lambda k, lbl: (k, 0)),        # fused weight tile
                pl.BlockSpec((1, 2 * F), lambda k, lbl: (0, 0)),         # fused bias
                pl.BlockSpec((2 * F, K), lambda k, lbl: (0, 0)),         # padded classifier W
                pl.BlockSpec((1, K), lambda k, lbl: (0, 0)),             # classifier bias
                pl.BlockSpec(memory_space=pltpu.MemorySpace.SMEM),       # loss weights
            ],
            out_specs=pl.BlockSpec(memory_space=pltpu.MemorySpace.SMEM),
            scratch_shapes=[pltpu.VMEM((B, 2 * F), jnp.float32)],
        ),
        compiler_params=pltpu.CompilerParams(
            dimension_semantics=("arbitrary",)),    # D is a reduction axis
    )(labels, x_bf16, W_both_bf16, b_both.astype(jnp.float32),
      W_cls_pad.astype(jnp.float32), b_cls.astype(jnp.float32), lw)

    return {
        "feature_regression": out[0],
        "target": out[1],
        "total": out[2],
    }


if __name__ == "__main__":
    # Small shapes consistent with the module's forward.
    B, C, H, W = 2, 4, 16, 16          # NCHW input
    D = C * H * W                      # 1024 flattened features
    F = 32                             # feature dim
    K = 8                              # number of classes

    key = jax.random.PRNGKey(0)
    k_x, k_wf, k_bf, k_wt, k_bt, k_wc, k_bc, k_t = jax.random.split(key, 8)

    x = jax.random.normal(k_x, (B, C, H, W), dtype=jnp.float32)

    # Deterministic parameter init (synthetic; no checkpoint loading).
    W_feat = jax.random.normal(k_wf, (D, F), dtype=jnp.float32) * 0.02
    b_feat = jax.random.normal(k_bf, (1, F), dtype=jnp.float32) * 0.02
    W_tgt = jax.random.normal(k_wt, (D, F), dtype=jnp.float32) * 0.02
    b_tgt = jax.random.normal(k_bt, (1, F), dtype=jnp.float32) * 0.02
    W_cls = jax.random.normal(k_wc, (F, K), dtype=jnp.float32) * 0.1
    b_cls = jax.random.normal(k_bc, (1, K), dtype=jnp.float32) * 0.1
    params = (W_feat, b_feat, W_tgt, b_tgt, W_cls, b_cls)

    # Integer class targets (nn.CrossEntropyLoss hard-label semantics).
    target = jax.random.randint(k_t, (B,), 0, K)

    # feature_regression_target_weights
    loss_weights = jnp.array([1.0, 0.5], dtype=jnp.float32)

    losses = feature_regression_criteria_forward(x, params, target, loss_weights)
    jax.block_until_ready(losses["total"])

    # Pure-JAX f32 reference (kernel matmuls use bf16 inputs -> loosened tolerance).
    x_flat = x.reshape(B, -1)
    feat = x_flat @ W_feat + b_feat
    tfeat = x_flat @ W_tgt + b_tgt
    logit = feat @ W_cls + b_cls
    ref_feat_loss = jnp.mean((feat - tfeat) ** 2)
    onehot = jax.nn.one_hot(target, K, dtype=jnp.float32)
    ref_tgt_loss = -jnp.mean(
        jnp.sum(onehot * jax.nn.log_softmax(logit, axis=-1), axis=-1))
    ref_total = ref_feat_loss * loss_weights[0] + ref_tgt_loss * loss_weights[1]

    assert jnp.allclose(losses["feature_regression"], ref_feat_loss,
                        rtol=2e-2, atol=2e-2), (losses["feature_regression"], ref_feat_loss)
    assert jnp.allclose(losses["target"], ref_tgt_loss,
                        rtol=2e-2, atol=2e-2), (losses["target"], ref_tgt_loss)
    assert jnp.allclose(losses["total"], ref_total,
                        rtol=2e-2, atol=2e-2), (losses["total"], ref_total)

    print("KERNEL_OK")
</pallas_src>

<mosaic_0001>
module attributes {stable_mosaic.version = 11 : i64} {
  func.func @_loss_kernel(%arg0: i32, %arg1: memref<2xi32, #tpu.memory_space<smem>>, %arg2: memref<2x512xbf16, #tpu.memory_space<vmem>>, %arg3: memref<512x64xbf16, #tpu.memory_space<vmem>>, %arg4: memref<1x64xf32, #tpu.memory_space<vmem>>, %arg5: memref<64x8xf32, #tpu.memory_space<vmem>>, %arg6: memref<1x8xf32, #tpu.memory_space<vmem>>, %arg7: memref<2xf32, #tpu.memory_space<smem>>, %arg8: memref<3xf32, #tpu.memory_space<smem>>, %arg9: memref<2x64xf32, #tpu.memory_space<vmem>>) attributes {dimension_semantics = [#tpu.dimension_semantics<arbitrary>], iteration_bounds = array<i64: 2>, scalar_prefetch = 1 : i64, scratch_operands = 1 : i64, tpu.core_type = #tpu.core_type<tc>, window_params = [{transform_indices = @transform_0, window_bounds = array<i64: 2, 512>}, {transform_indices = @transform_1, window_bounds = array<i64: 512, 64>}, {pipeline_mode = #tpu.pipeline_mode<synchronous>, transform_indices = @transform_2, window_bounds = array<i64: 1, 64>}, {pipeline_mode = #tpu.pipeline_mode<synchronous>, transform_indices = @transform_3, window_bounds = array<i64: 64, 8>}, {pipeline_mode = #tpu.pipeline_mode<synchronous>, transform_indices = @transform_4, window_bounds = array<i64: 1, 8>}, {transform_indices = @transform_5, window_bounds = array<i64: 2>}, {transform_indices = @transform_6, window_bounds = array<i64: 3>}]} {
    %c0_i32 = arith.constant 0 : i32
    %0 = arith.cmpi eq, %arg0, %c0_i32 : i32
    %1 = arith.extui %0 : i1 to i32
    %c0_i32_0 = arith.constant 0 : i32
    %2 = arith.cmpi ne, %1, %c0_i32_0 : i32
    scf.if %2 {
      %cst_9 = arith.constant 0.000000e+00 : f32
      %12 = vector.broadcast %cst_9 : f32 to vector<2x64xf32>
      %c0_10 = arith.constant 0 : index
      %c0_11 = arith.constant 0 : index
      %13 = vector.load %arg9[%c0_10, %c0_11] : memref<2x64xf32, #tpu.memory_space<vmem>>, vector<2x64xf32>
      tpu.vector_store %arg9[%c0_10, %c0_11], %12 {strides = array<i32>} : memref<2x64xf32, #tpu.memory_space<vmem>>, vector<2x64xf32>,
    } else {
    }
    %c0 = arith.constant 0 : index
    %c0_1 = arith.constant 0 : index
    %3 = vector.load %arg9[%c0, %c0_1] : memref<2x64xf32, #tpu.memory_space<vmem>>, vector<2x64xf32>
    %c0_2 = arith.constant 0 : index
    %c0_3 = arith.constant 0 : index
    %4 = vector.load %arg2[%c0_2, %c0_3] : memref<2x512xbf16, #tpu.memory_space<vmem>>, vector<2x512xbf16>
    %c0_4 = arith.constant 0 : index
    %c0_5 = arith.constant 0 : index
    %5 = vector.load %arg3[%c0_4, %c0_5] : memref<512x64xbf16, #tpu.memory_space<vmem>>, vector<512x64xbf16>
    %cst = arith.constant dense<0.000000e+00> : vector<2x64xf32>
    %6 = tpu.matmul %4, %5, %cst {dimension_numbers = #tpu.dot_dimension_numbers<[1], [0], [0], [1], [0, 0, 1, 1], [], []>} : vector<2x512xbf16>, vector<512x64xbf16>, vector<2x64xf32> -> vector<2x64xf32>
    %7 = arith.addf %3, %6 : vector<2x64xf32>
    %c0_6 = arith.constant 0 : index
    %c0_7 = arith.constant 0 : index
    %8 = vector.load %arg9[%c0_6, %c0_7] : memref<2x64xf32, #tpu.memory_space<vmem>>, vector<2x64xf32>
    tpu.vector_store %arg9[%c0_6, %c0_7], %7 {strides = array<i32>} : memref<2x64xf32, #tpu.memory_space<vmem>>, vector<2x64xf32>,
    %c1_i32 = arith.constant 1 : i32
    %9 = arith.cmpi eq, %arg0, %c1_i32 : i32
    %10 = arith.extui %9 : i1 to i32
    %c0_i32_8 = arith.constant 0 : i32
    %11 = arith.cmpi ne, %10, %c0_i32_8 : i32
    scf.if %11 {
      %c0_9 = arith.constant 0 : index
      %c0_10 = arith.constant 0 : index
      %12 = vector.load %arg9[%c0_9, %c0_10] : memref<2x64xf32, #tpu.memory_space<vmem>>, vector<2x64xf32>
      %c0_11 = arith.constant 0 : index
      %c0_12 = arith.constant 0 : index
      %13 = vector.load %arg4[%c0_11, %c0_12] : memref<1x64xf32, #tpu.memory_space<vmem>>, vector<1x64xf32>
      %14 = vector.broadcast %13 : vector<1x64xf32> to vector<2x64xf32>
      %15 = arith.addf %12, %14 : vector<2x64xf32>
      %16 = tpu.iota {dimensions = array<i32: 1>} : vector<2x64xi32>
      %c32_i32 = arith.constant 32 : i32
      %17 = vector.broadcast %c32_i32 : i32 to vector<2x64xi32>
      %18 = arith.cmpi sge, %16, %17 : vector<2x64xi32>
      %cst_13 = arith.constant 0.000000e+00 : f32
      %19 = vector.broadcast %cst_13 : f32 to vector<2x64xf32>
      %20 = arith.select %18, %15, %19 : vector<2x64xi1>, vector<2x64xf32>
      %21 = arith.mulf %20, %20 : vector<2x64xf32>
      %22 = vector.shape_cast %21 : vector<2x64xf32> to vector<1x2x64xf32>
      %cst_14 = arith.constant dense<0.000000e+00> : vector<1xf32>
      %23 = vector.multi_reduction <add>, %22, %cst_14 [1, 2] : vector<1x2x64xf32> to vector<1xf32>
      %24 = vector.shape_cast %23 : vector<1xf32> to vector<1x1x1xf32>
      %25 = vector.extract %24[0, 0, 0] : f32 from vector<1x1x1xf32>
      %cst_15 = arith.constant 6.400000e+01 : f32
      %26 = arith.divf %25, %cst_15 : f32
      %c0_16 = arith.constant 0 : index
      %c0_17 = arith.constant 0 : index
      %27 = vector.load %arg5[%c0_16, %c0_17] : memref<64x8xf32, #tpu.memory_space<vmem>>, vector<64x8xf32>
      %cst_18 = arith.constant dense<0.000000e+00> : vector<2x8xf32>
      %28 = tpu.matmul %15, %27, %cst_18 {dimension_numbers = #tpu.dot_dimension_numbers<[1], [0], [0], [1], [0, 0, 1, 1], [], []>} : vector<2x64xf32>, vector<64x8xf32>, vector<2x8xf32> -> vector<2x8xf32>
      %c0_19 = arith.constant 0 : index
      %c0_20 = arith.constant 0 : index
      %29 = vector.load %arg6[%c0_19, %c0_20] : memref<1x8xf32, #tpu.memory_space<vmem>>, vector<1x8xf32>
      %30 = vector.broadcast %29 : vector<1x8xf32> to vector<2x8xf32>
      %31 = arith.addf %28, %30 : vector<2x8xf32>
      %cst_21 = arith.constant dense<0xFF800000> : vector<2xf32>
      %32 = vector.multi_reduction <maximumf>, %31, %cst_21 [1] : vector<2x8xf32> to vector<2xf32>
      %33 = vector.shape_cast %32 : vector<2xf32> to vector<2x1xf32>
      %34 = vector.broadcast %33 : vector<2x1xf32> to vector<2x8xf32>
      %35 = arith.subf %31, %34 : vector<2x8xf32>
      %36 = math.exp %35 : vector<2x8xf32>
      %cst_22 = arith.constant dense<0.000000e+00> : vector<2xf32>
      %37 = vector.multi_reduction <add>, %36, %cst_22 [1] : vector<2x8xf32> to vector<2xf32>
      %38 = vector.shape_cast %37 : vector<2xf32> to vector<2x1xf32>
      %39 = math.log %38 : vector<2x1xf32>
      %40 = arith.addf %39, %33 : vector<2x1xf32>
      %41 = vector.broadcast %40 : vector<2x1xf32> to vector<2x8xf32>
      %42 = arith.subf %31, %41 : vector<2x8xf32>
      %43 = tpu.iota {dimensions = array<i32: 1>} : vector<1x8xi32>
      %c0_23 = arith.constant 0 : index
      %44 = memref.load %arg1[%c0_23] : memref<2xi32, #tpu.memory_space<smem>>
      %45 = vector.broadcast %44 : i32 to vector<1x8xi32>
      %46 = arith.cmpi eq, %43, %45 : vector<1x8xi32>
      %47 = vector.extract_strided_slice %42 {offsets = [0, 0], sizes = [1, 8], strides = [1, 1]} : vector<2x8xf32> to vector<1x8xf32>
      %cst_24 = arith.constant 0.000000e+00 : f32
      %48 = vector.broadcast %cst_24 : f32 to vector<1x8xf32>
      %49 = arith.select %46, %47, %48 : vector<1x8xi1>, vector<1x8xf32>
      %50 = vector.shape_cast %49 : vector<1x8xf32> to vector<1x1x8xf32>
      %cst_25 = arith.constant dense<0.000000e+00> : vector<1xf32>
      %51 = vector.multi_reduction <add>, %50, %cst_25 [1, 2] : vector<1x1x8xf32> to vector<1xf32>
      %52 = vector.shape_cast %51 : vector<1xf32> to vector<1x1x1xf32>
      %53 = vector.extract %52[0, 0, 0] : f32 from vector<1x1x1xf32>
      %cst_26 = arith.constant 0.000000e+00 : f32
      %54 = arith.subf %cst_26, %53 : f32
      %c1 = arith.constant 1 : index
      %55 = memref.load %arg1[%c1] : memref<2xi32, #tpu.memory_space<smem>>
      %56 = vector.broadcast %55 : i32 to vector<1x8xi32>
      %57 = arith.cmpi eq, %43, %56 : vector<1x8xi32>
      %58 = vector.extract_strided_slice %42 {offsets = [1, 0], sizes = [1, 8], strides = [1, 1]} : vector<2x8xf32> to vector<1x8xf32>
      %cst_27 = arith.constant 0.000000e+00 : f32
      %59 = vector.broadcast %cst_27 : f32 to vector<1x8xf32>
      %60 = arith.select %57, %58, %59 : vector<1x8xi1>, vector<1x8xf32>
      %61 = vector.shape_cast %60 : vector<1x8xf32> to vector<1x1x8xf32>
      %cst_28 = arith.constant dense<0.000000e+00> : vector<1xf32>
      %62 = vector.multi_reduction <add>, %61, %cst_28 [1, 2] : vector<1x1x8xf32> to vector<1xf32>
      %63 = vector.shape_cast %62 : vector<1xf32> to vector<1x1x1xf32>
      %64 = vector.extract %63[0, 0, 0] : f32 from vector<1x1x1xf32>
      %65 = arith.subf %54, %64 : f32
      %cst_29 = arith.constant 2.000000e+00 : f32
      %66 = arith.divf %65, %cst_29 : f32
      %c0_30 = arith.constant 0 : index
      %67 = memref.load %arg7[%c0_30] : memref<2xf32, #tpu.memory_space<smem>>
      %68 = arith.mulf %26, %67 : f32
      %c1_31 = arith.constant 1 : index
      %69 = memref.load %arg7[%c1_31] : memref<2xf32, #tpu.memory_space<smem>>
      %70 = arith.mulf %66, %69 : f32
      %71 = arith.addf %68, %70 : f32
      %c0_32 = arith.constant 0 : index
      %72 = memref.load %arg8[%c0_32] : memref<3xf32, #tpu.memory_space<smem>>
      memref.store %26, %arg8[%c0_32] : memref<3xf32, #tpu.memory_space<smem>>
      %c1_33 = arith.constant 1 : index
      %73 = memref.load %arg8[%c1_33] : memref<3xf32, #tpu.memory_space<smem>>
      memref.store %66, %arg8[%c1_33] : memref<3xf32, #tpu.memory_space<smem>>
      %c2 = arith.constant 2 : index
      %74 = memref.load %arg8[%c2] : memref<3xf32, #tpu.memory_space<smem>>
      memref.store %71, %arg8[%c2] : memref<3xf32, #tpu.memory_space<smem>>
    } else {
    }
    return
  }
  func.func @transform_0(%arg0: i32, %arg1: memref<2xi32, #tpu.memory_space<smem>>) -> (i32, i32) {
    %c0_i32 = arith.constant 0 : i32
    %c0_i32_0 = arith.constant 0 : i32
    return %c0_i32, %arg0 : i32, i32
  }
  func.func @transform_1(%arg0: i32, %arg1: memref<2xi32, #tpu.memory_space<smem>>) -> (i32, i32) {
    %c0_i32 = arith.constant 0 : i32
    %c0_i32_0 = arith.constant 0 : i32
    return %arg0, %c0_i32 : i32, i32
  }
  func.func @transform_2(%arg0: i32, %arg1: memref<2xi32, #tpu.memory_space<smem>>) -> (i32, i32) {
    %c0_i32 = arith.constant 0 : i32
    %c0_i32_0 = arith.constant 0 : i32
    %c0_i32_1 = arith.constant 0 : i32
    return %c0_i32, %c0_i32_0 : i32, i32
  }
  func.func @transform_3(%arg0: i32, %arg1: memref<2xi32, #tpu.memory_space<smem>>) -> (i32, i32) {
    %c0_i32 = arith.constant 0 : i32
    %c0_i32_0 = arith.constant 0 : i32
    %c0_i32_1 = arith.constant 0 : i32
    return %c0_i32, %c0_i32_0 : i32, i32
  }
  func.func @transform_4(%arg0: i32, %arg1: memref<2xi32, #tpu.memory_space<smem>>) -> (i32, i32) {
    %c0_i32 = arith.constant 0 : i32
    %c0_i32_0 = arith.constant 0 : i32
    %c0_i32_1 = arith.constant 0 : i32
    return %c0_i32, %c0_i32_0 : i32, i32
  }
  func.func @transform_5(%arg0: i32, %arg1: memref<2xi32, #tpu.memory_space<smem>>) -> i32 {
    %c0_i32 = arith.constant 0 : i32
    %c0_i32_0 = arith.constant 0 : i32
    return %c0_i32 : i32
  }
  func.func @transform_6(%arg0: i32, %arg1: memref<2xi32, #tpu.memory_space<smem>>) -> i32 {
    %c0_i32 = arith.constant 0 : i32
    %c0_i32_0 = arith.constant 0 : i32
    return %c0_i32 : i32
  }
}

</mosaic_0001>

<bundles_post_ra>
// kernel: tpu_custom_call.1
= control target key start
LH: loop header
LB: loop body
LE: loop exit
PB: predicated region body
PF: predicated region fallthrough
CT: control target
= control target key end

     0   :  { %s1356_s0 = inlined_call_operand.vmem [shape: s32[2], index: 0, kind: input, shape index: {}]   ;;  %s1357_s1 = inlined_call_operand.vmem [shape: bf16[2,1024], index: 1, kind: input, shape index: {}]   ;;  %s1358_s2 = inlined_call_operand.vmem [shape: bf16[1024,64], index: 2, kind: input, shape index: {}]   ;;  %s1359_s3 = inlined_call_operand.vmem [shape: f32[1,64], index: 3, kind: input, shape index: {}]   ;;  %s1360_s4 = inlined_call_operand.vmem [shape: f32[64,8], index: 4, kind: input, shape index: {}]   ;;  %s1361_s5 = inlined_call_operand.vmem [shape: f32[1,8], index: 5, kind: input, shape index: {}]   ;;  %s1362_s6 = inlined_call_operand.vmem [shape: f32[2], index: 6, kind: input, shape index: {}]   ;;  %s1363_s7 = inlined_call_operand.hbm [shape: f32[3], index: 7, kind: output, shape index: {}]  }
   0x1   :  { %s12_s26 = sshll.u32 %s1356_s0, 4  ;;  %s13_s26 = int_to_ptr.vmem [resolvable:$true] %s12_s26 }
   0x2   :  { %s1116_s27 = scalar_lea.vmem %s13_s26, 16  ;;  %p1121_p1 = scmp.lt.s32.totalorder %s13_s26, %s13_s26 }
   0x3   :  { %p1117_p0 = scmp.ne.s32.totalorder %s13_s26, %s1116_s27  ;;  %p1122_p2 = scmp.lt.s32.totalorder %s1116_s27, %s1116_s27 }
   0x5   :  { %p1123_p3 = por %p1122_p2, %p1121_p1 }
   0x7   :  { %p1124_p4 = pnand %p1123_p3, %p1117_p0 }
   0x9   :  { %1127 = shalt.err (!%p1124_p4)  }
   0xa   :  { %s1173_s28 = smov [#allocation4]  }
   0xb   :  { %15 = dma.vmem_to_smem %s13_s26, 16, %s1173_s28, [#allocation3] }
   0xc   :  { %1159 = dma.done.wait [#allocation3], 16 }
   0xd   :  { %1160 = vsyncadd [#allocation3], 4294967280 }
   0xe   :  { %17 = sfence }
   0xf   :  { %18 = vsyncpa [#allocation7], 0 }
  0x10   :  { %19 = vsyncpa [#allocation6], 0  ;;  %s1224_s29 = smov 0  }
  0x11 LB: > { %s1230_s0 = sadd.s32 4294967295, %s1171_s29   ;;  %p906_p5 = scmp.ge.s32.totalorder %s1171_s29, 1  ;;  %s1171_s29 = sphi %s1224_s29, %s25_s29  }
  0x12   : > { %p187_p6 = scmp.lt.s32.totalorder %s1171_s29, 3  ;;  %s209_s9 = sshll.u32 %s1362_s6, 4  ;;  %s210_s9 = int_to_ptr.vmem [resolvable:$true] %s209_s9 }
  0x13   : > { %p1060_p9 = scmp.eq.s32.totalorder %s1230_s0, 0  ;;  %s1128_s11 = scalar_lea.vmem %s210_s9, 16 }
  0x14   : > { %p1238_p8 = pnand %p906_p5, %p187_p6  ;;  %p1129_p12 = scmp.ne.s32.totalorder %s210_s9, %s1128_s11 }
  0x15   : > { %p1136_p2 = scmp.lt.s32.totalorder %s210_s9, %s210_s9  ;;  %p1137_p3 = scmp.lt.s32.totalorder %s1128_s11, %s1128_s11 }
  0x16   : > { %p1056_p10 = pneg %p1238_p8 }
  0x17   : > { %p1138_p4 = por %p1137_p3, %p1136_p2 }
  0x18   : > { %p1057_p11 = pnand %p1060_p9, %p1056_p10 }
  0x1a   : > { %p1130_p13 = pneg %p1057_p11 }
  0x1c   : > { %p1131_p0 = pnand %p1130_p13, %p1129_p12 }
  0x1e   : > { %p1132_p1 = pneg %p1131_p0 }
  0x20   : > { %p1139_p7 = pnand %p1138_p4, %p1132_p1 }
  0x22   : > { %1142 = shalt.err (!%p1139_p7)
}
  0x23   : > { %s1174_s12 = smov [#allocation5]   ;;  %239 = sbr.rel (%p1238_p8) target bundleno = 1085 (0x43d), region = 44 }
  0x24   : > { %1059 = dma.vmem_to_smem (!%p1057_p11), %s210_s9, 16, %s1174_s12, [#allocation7]  }
  0x2a   : > { %1162 = dma.done.wait (%p1060_p9), [#allocation7], 16  }
  0x2b   : > { %1164 = vsyncadd (%p1060_p9), [#allocation7], 4294967280 }
  0x2c   : > { %245 = sfence }
  0x2d   : > { %s911_s13 = sshll.u32 %s1230_s0, 2  ;;  %s912_s14 = sshll.u32 %s1230_s0, 6 }
  0x2e   : > { %p270_p5 = scmp.lt.s32.totalorder %s911_s13, 7  ;;  %p275_p6 = scmp.lt.s32.totalorder %s912_s14, 127 }
  0x2f   : > { %p1365_p7 = scmp.ne.s32.totalorder %s1230_s0, 0 }
  0x30   : > { %s1367_s13 = smov (!%p270_p5, %s911_s13), 7  ;;  %s1369_s14 = smov (!%p275_p6, %s912_s14), 127 }
  0x31   : > { %s272_s17 = scalar_lea.vmem %s1357_s1, %s1367_s13  ;;  %s913_s18 = sshll.u32 %s1369_s14, 2  ;;  %vm285_vm0 = vcmask (!%p1365_p7), 517120   ;;  %v1175_v0 = vmov (!%p1365_p7), 0.0  }
  0x32   : > { %s1264_s21 = scalar_lea.vmem %s1358_s2, %s913_s18  ;;  %284 = sbr.rel (%p1365_p7) target bundleno = 57 (0x39), region = 52  ;;  %286 = vst.msk [vmem:[#allocation2] sm:$0x3] (!%p1365_p7), %vm285_vm0, %v1175_v0 }
  0x39 PF: > { %v1080_v1 = vld [vmem:[%s1264_s21 + $0x40] sm:$0xff]   ;;  %v1084_v5 = vld [vmem:[%s1264_s21 + $0x48] sm:$0xff]   ;;  %v1088_v9 = vld [vmem:[%s1264_s21 + $0x50] sm:$0xff]   ;;  %v365_v31 = vlaneseq  ;;  %v1176_v35 = vmov 1966171168   ;;  %vm655_vm1 = vcmask 517120  }
  0x3a   : > { %v1081_v2 = vld [vmem:[%s1264_s21 + $0xc0] sm:$0xff]   ;;  %958 = vmatprep.subr.bf16.mxu0 %v1080_v1  ;;  %v1085_v6 = vld [vmem:[%s1264_s21 + $0xc8] sm:$0xff]   ;;  %v1089_v10 = vld [vmem:[%s1264_s21 + $0xd0] sm:$0xff]   ;;  %v363_v36 = vunpack.c.l.s4 %v1176_v35  ;;  %p948_p8 = scmp.ne.s32.totalorder %s1230_s0, 1 }
  0x3b   : > { %v1082_v3 = vld [vmem:[%s1264_s21] sm:$0xff]   ;;  %980 = vmatprep.subr.bf16.mxu1 %v1081_v2  ;;  %v1086_v7 = vld [vmem:[%s1264_s21 + $0x8] sm:$0xff]   ;;  %v1090_v11 = vld [vmem:[%s1264_s21 + $0x10] sm:$0xff]   ;;  %v366_v37 = vshrl.u32 %v365_v31, 7  ;;  %v1177_v61 = vmov (!%p948_p8), 0.0|0.0   ;;  %vm1178_vm2 = vmmov (!%p948_p8), 0  }
  0x3c   : > { %v1083_v4 = vld [vmem:[%s1264_s21 + $0x80] sm:$0xff]   ;;  %959 = vmatpush3.bf16.msra.mxu0 %v1082_v3  ;;  %v1087_v8 = vld [vmem:[%s1264_s21 + $0x88] sm:$0xff]   ;;  %v1091_v12 = vld [vmem:[%s1264_s21 + $0x90] sm:$0xff]   ;;  %v364_v39 = vunpack.c.0.s8 %v363_v36  ;;  %v1179_v0 = vmov (!%p948_p8), 0.0   ;;  %vm703_vm3 = vcmask (!%p948_p8), 523264   ;;  %vm777_vm4 = vcmask (!%p948_p8), 58368  }
  0x3d   : > { %981 = vmatpush3.bf16.msra.mxu1 %v1083_v4  ;;  %960 = vmatprep.subr.bf16.mxu0 %v1084_v5  ;;  %v1092_v13 = vld [vmem:[%s1264_s21 + $0x58] sm:$0xff]   ;;  %v1096_v17 = vld [vmem:[%s1264_s21 + $0x60] sm:$0xff]   ;;  %v1100_v21 = vld [vmem:[%s1264_s21 + $0x68] sm:$0xff]   ;;  %s791_s22 = sld [smem:[#allocation4]] (!%p948_p8)  ;;  %s952_s23 = sld [smem:[#allocation4 + $0x1]] (!%p948_p8)  ;;  %vm795_vm8 = vcmask (!%p948_p8), 57344  }
  0x3e   : > { %982 = vmatprep.subr.bf16.mxu1 %v1085_v6  ;;  %v1093_v14 = vld [vmem:[%s1264_s21 + $0xd8] sm:$0xff]   ;;  %v1097_v18 = vld [vmem:[%s1264_s21 + $0xe0] sm:$0xff]   ;;  %v1101_v22 = vld [vmem:[%s1264_s21 + $0xe8] sm:$0xff]   ;;  %v367_v40 = vsub.s32 %v364_v39, %v366_v37  ;;  %s828_s26 = sld [smem:[#allocation5]] (!%p948_p8)  ;;  %s953_s27 = sld [smem:[#allocation5 + $0x1]] (!%p948_p8) }
  0x3f   : > { %v1094_v15 = vld [vmem:[%s1264_s21 + $0x18] sm:$0xff]   ;;  %v1098_v19 = vld [vmem:[%s1264_s21 + $0x20] sm:$0xff]   ;;  %v1102_v23 = vld [vmem:[%s1264_s21 + $0x28] sm:$0xff]  }
  0x40   : > { %961 = vmatpush3.bf16.msra.mxu0 %v1086_v7  ;;  %v1095_v16 = vld [vmem:[%s1264_s21 + $0x98] sm:$0xff]   ;;  %v1099_v20 = vld [vmem:[%s1264_s21 + $0xa0] sm:$0xff]   ;;  %v1103_v24 = vld [vmem:[%s1264_s21 + $0xa8] sm:$0xff]  }
  0x41   : > { %983 = vmatpush3.bf16.msra.mxu1 %v1087_v8  ;;  %962 = vmatprep.subr.bf16.mxu0 %v1088_v9  ;;  %v1104_v25 = vld [vmem:[%s1264_s21 + $0x70] sm:$0xff]   ;;  %v1108_v29 = vld [vmem:[%s1264_s21 + $0x78] sm:$0xff]   ;;  %v915_v34 = vld.sshfl [vmem:[%s272_s17] sm:$0x33 pattern:$0x75316420] }
  0x42   : > { %984 = vmatprep.subr.bf16.mxu1 %v1089_v10  ;;  %v1105_v26 = vld [vmem:[%s1264_s21 + $0xf0] sm:$0xff]   ;;  %v1109_v30 = vld [vmem:[%s1264_s21 + $0xf8] sm:$0xff]   ;;  %v361_v38 = vcombine.high %v915_v34, %v915_v34  ;;  %v368_v42 = vrot.slane %v915_v34, %v367_v40  ;;  %v287_v54 = vld [vmem:[#allocation2] sm:$0x3] }
  0x43   : > { %v1106_v27 = vld [vmem:[%s1264_s21 + $0x30] sm:$0xff]   ;;  %v1110_v32 = vld [vmem:[%s1264_s21 + $0x38] sm:$0xff]   ;;  %v688_v58 = vld [vmem:[%s1360_s4] sm:$0xff] (!%p948_p8) }
  0x44   : > { %963 = vmatpush3.bf16.msra.mxu0 %v1090_v11  ;;  %v1107_v28 = vld [vmem:[%s1264_s21 + $0xb0] sm:$0xff]   ;;  %v1111_v33 = vld [vmem:[%s1264_s21 + $0xb8] sm:$0xff]   ;;  %v375_v41 = vrot.slane %v361_v38, %v367_v40  ;;  %v376_v44 = vcombine.high %v368_v42, %v368_v42  ;;  %v689_v59 = vld [vmem:[%s1360_s4 + $0x8] sm:$0xff] (!%p948_p8) }
  0x45   : > { %985 = vmatpush3.bf16.msra.mxu1 %v1091_v12  ;;  %964 = vmatprep.subr.bf16.mxu0 %v1092_v13  ;;  %v690_v60 = vld [vmem:[%s1360_s4 + $0x10] sm:$0xff] (!%p948_p8)  ;;  %v1031_v62 = vpack.c.bf16 (!%p948_p8), %v689_v59, %v688_v58  ;;  %v691_v63 = vld [vmem:[%s1360_s4 + $0x18] sm:$0xff] (!%p948_p8)  ;;  %v692_v2 = vld [vmem:[%s1360_s4 + $0x20] sm:$0xff] (!%p948_p8) }
  0x46   : > { %986 = vmatprep.subr.bf16.mxu1 %v1093_v14  ;;  %606 = vmatprep.mubr.bf16.mxu0 %v375_v41  ;;  %v377_v43 = vcombine.high %v375_v41, %v375_v41  ;;  %v1034_v1 = vpack.c.bf16 (!%p948_p8), %v691_v63, %v690_v60  ;;  %v693_v3 = vld [vmem:[%s1360_s4 + $0x28] sm:$0xff] (!%p948_p8)  ;;  %v694_v5 = vld [vmem:[%s1360_s4 + $0x30] sm:$0xff] (!%p948_p8)  ;;  %v695_v6 = vld [vmem:[%s1360_s4 + $0x38] sm:$0xff] (!%p948_p8) }
  0x47   : > { %v1037_v4 = vpack.c.bf16 (!%p948_p8), %v693_v3, %v692_v2  ;;  %v1040_v7 = vpack.c.bf16 (!%p948_p8), %v695_v6, %v694_v5  ;;  %v949_v9 = vld [vmem:[%s1359_s3] ss:$0 sm:$0xff] (!%p948_p8) }
  0x48   : > { %965 = vmatpush3.bf16.msra.mxu0 %v1094_v15  ;;  %646 = vmatprep.mubr.bf16.mxu1 %v377_v43  ;;  %v950_v11 = vld [vmem:[%s1361_s5] ss:$0 sm:$0xff] (!%p948_p8) }
  0x49   : > { %987 = vmatpush3.bf16.msra.mxu1 %v1095_v16  ;;  %966 = vmatprep.subr.bf16.mxu0 %v1096_v17 }
  0x4a   : > { %988 = vmatprep.subr.bf16.mxu1 %v1097_v18 }
  0x4c   : > { %967 = vmatpush3.bf16.msra.mxu0 %v1098_v19 }
  0x4d   : > { %989 = vmatpush3.bf16.msra.mxu1 %v1099_v20  ;;  %968 = vmatprep.subr.bf16.mxu0 %v1100_v21  ;;  %v671_v21 = vand.u32 (!%p948_p8), 127, %v365_v31 }
  0x4e   : > { %990 = vmatprep.subr.bf16.mxu1 %v1101_v22 }
  0x4f   : > { %vm672_vm5 = vcmp.ge.s32.totalorder (!%p948_p8), %v671_v21, 32 }
  0x50   : > { %969 = vmatpush3.bf16.msra.mxu0 %v1102_v23 }
  0x51   : > { %991 = vmatpush3.bf16.msra.mxu1 %v1103_v24  ;;  %970 = vmatprep.subr.bf16.mxu0 %v1104_v25 }
  0x52   : > { %992 = vmatprep.subr.bf16.mxu1 %v1105_v26 }
  0x54   : > { %971 = vmatpush3.bf16.msra.mxu0 %v1106_v27 }
  0x55   : > { %993 = vmatpush3.bf16.msra.mxu1 %v1107_v28  ;;  %972 = vmatprep.subr.bf16.mxu0 %v1108_v29  ;;  %v792_v28 = vstv (!%p948_p8), %s791_s22  ;;  %v808_v29 = vstv (!%p948_p8), %s952_s23 }
  0x56   : > { %994 = vmatprep.subr.bf16.mxu1 %v1109_v30  ;;  %vm793_vm6 = vcmp.eq.s32.totalorder (!%p948_p8), %v671_v21, %v792_v28  ;;  %vm809_vm7 = vcmp.eq.s32.totalorder (!%p948_p8), %v671_v21, %v808_v29 }
  0x58   : > { %973 = vmatpush3.bf16.msra.mxu0 %v1110_v32 }
  0x59   : > { %995 = vmatpush3.bf16.msra.mxu1 %v1111_v33  ;;  %1030 = vmatprep.subr.bf16.mxu0 (!%p948_p8), %v1177_v61 }
  0x5b   : > { %607 = vmatmul.mubr.bf16.vlgmr.msra.gmra.mrb[0].mxu0 %v368_v42 }
  0x5c   : > { %647 = vmatmul.mubr.bf16.vlgmr.msra.gmra.mrb[0].mxu1 %v376_v44  ;;  %1027 = vmatprep.mubr.msk.f32.mxu0 (!%p948_p8), %vm1178_vm2, %v1179_v0 }
  0x5d   : > { %1032 = vmatpush3.bf16.msra.mxu0 (!%p948_p8), %v1031_v62 }
  0x5e   : > { %1033 = vmatprep.subr.bf16.mxu0 (!%p948_p8), %v1177_v61 }
  0x61   : > { %1035 = vmatpush3.bf16.msra.mxu0 (!%p948_p8), %v1034_v1 }
  0x62   : > { %1036 = vmatprep.subr.bf16.mxu0 (!%p948_p8), %v1177_v61 }
  0x65   : > { %1038 = vmatpush3.bf16.msra.mxu0 (!%p948_p8), %v1037_v4 }
  0x66   : > { %1039 = vmatprep.subr.bf16.mxu0 (!%p948_p8), %v1177_v61 }
  0x69   : > { %1041 = vmatpush3.bf16.msra.mxu0 (!%p948_p8), %v1040_v7 }
 0x12e   : > { %v974_v45 = vpop.f32.mrb[0].mxu0 }
 0x12f   : > { %v975_v46 = vpop.f32.mrb[1].mxu0  ;;  %v996_v47 = vpop.f32.mrb[0].mxu1 }
 0x130   : > { %v976_v48 = vadd.f32 %v975_v46, %v974_v45  ;;  %v977_v49 = vpop.f32.mrb[2].mxu0  ;;  %v997_v50 = vpop.f32.mrb[1].mxu1 }
 0x131   : > { %v978_v51 = vpop.f32.mrb[3].mxu0  ;;  %v998_v52 = vadd.f32 %v997_v50, %v996_v47  ;;  %v999_v53 = vpop.f32.mrb[2].mxu1  ;;  %660 = sbr.rel (%p948_p8) target bundleno = 1070 (0x42e), region = 56 }
 0x132   : > { %v1000_v55 = vpop.f32.mrb[3].mxu1 }
 0x133   : > { %v649_v56 = vadd.f32 %v998_v52, %v976_v48 }
 0x135   : > { %v654_v57 = vadd.f32 %v649_v56, %v287_v54 }
 0x137   : > { %656 = vst.msk [vmem:[#allocation2] sm:$0x3] %vm655_vm1, %v654_v57 }
 0x13e   : > { %v661_v8 = vld [vmem:[#allocation2] sm:$0x3] }
 0x13f   : > { %v669_v10 = vadd.f32 %v949_v9, %v661_v8 }
 0x141   : > { %1028 = vmatmul.mubr.msk.f32.vlgmr.msra.gmra.mrb[0].mxu0 %vm703_vm3, %v669_v10  ;;  %v673_v22 = vsel %vm672_vm5, %v669_v10, 0.0 }
 0x142   : > { %v674_v23 = vmul.f32 %v673_v22, %v673_v22 }
 0x144   : > { %v675_v24 = vsel %vm655_vm1, %v674_v23, 0.0 }
 0x145   : > { %676 = vadd.xlane.f32.xlu1 %v675_v24 }
 0x1d2   : > { %v677_v37 = vpop.xlane.xlu1 %676 }
 0x1d3   : > { %v678_v38 = vrot.slane %v677_v37, 4 }
 0x1d5   : > { %v679_v39 = vadd.f32 %v678_v38, %v677_v37 }
 0x1d7   : > { %v680_v40 = vrot.slane %v679_v39, 2 }
 0x1d9   : > { %v681_v41 = vadd.f32 %v680_v40, %v679_v39 }
 0x1db   : > { %v682_v42 = vrot.slane %v681_v41, 1 }
 0x1dd   : > { %v683_v43 = vadd.f32 %v682_v42, %v681_v41 }
 0x1df   : > { %1042 = vpush %v683_v43 }
 0x210   : > { %s1043_s24 = spop %1042 }
 0x211   : > { %s687_s25 = smul.f32 0.015625, %s1043_s24 }
 0x213   : > { %834 = sst [smem:[#allocation8]] %s687_s25  ;;  %s829_s11 = smul.f32 %s828_s26, %s687_s25 }
 0x214   : > { %v773_v12 = vpop.f32.mrb[0].mxu0 }
 0x215   : > { %v774_v13 = vadd.f32 %v950_v11, %v773_v12  ;;  %v1029_v14 = vpop.f32.mrb[1].mxu0 }
 0x217   : > { %v778_v15 = vsel %vm777_vm4, %v774_v13, -inf }
 0x218   : > { %779 = vmax.xlane.f32.xlu0 %v778_v15 }
 0x2a5   : > { %v780_v16 = vpop.xlane.xlu0 %779 }
 0x2a6   : > { %v781_v17 = vsub.f32 %v774_v13, %v780_v16 }
 0x2a8   : > { %v782_v18 = vmul.f32 1.442695, %v781_v17 }
 0x2aa   : > { %1112 = vpow2.f32 %v782_v18 }
 0x2b4   : > { %v1113_v19 = vpop.eup %1112 }
 0x2b5   : > { %v784_v20 = vsel %vm777_vm4, %v1113_v19, 0.0 }
 0x2b6   : > { %785 = vadd.xlane.f32.xlu0 %v784_v20 }
 0x343   : > { %v786_v25 = vpop.xlane.xlu0 %785 }
 0x344   : > { %1114 = vlog2.f32 %v786_v25 }
 0x34e   : > { %v1115_v26 = vpop.eup %1114 }
 0x34f   : > { %v788_v27 = vmul.f32 0.6931472, %v1115_v26 }
 0x351   : > { %v789_v30 = vadd.f32 %v788_v27, %v780_v16 }
 0x353   : > { %v790_v32 = vsub.f32 %v774_v13, %v789_v30 }
 0x355   : > { %v794_v31 = vsel %vm793_vm6, %v790_v32, 0.0  ;;  %v810_v33 = vsel %vm809_vm7, %v790_v32, 0.0 }
 0x356   : > { %v796_v34 = vsel %vm795_vm8, %v794_v31, 0.0  ;;  %v812_v35 = vrot.slane %v810_v33, 1 }
 0x357   : > { %797 = vadd.xlane.f32.xlu1 %v796_v34 }
 0x358   : > { %v814_v36 = vsel %vm795_vm8, %v812_v35, 0.0 }
 0x359   : > { %815 = vadd.xlane.f32.xlu0 %v814_v36 }
 0x3e4   : > { %v798_v44 = vpop.xlane.xlu1 %797 }
 0x3e5   : > { %v799_v45 = vrot.slane %v798_v44, 4 }
 0x3e6   : > { %v816_v46 = vpop.xlane.xlu0 %815 }
 0x3e7   : > { %v800_v47 = vadd.f32 %v799_v45, %v798_v44  ;;  %v817_v48 = vrot.slane %v816_v46, 4 }
 0x3e9   : > { %v801_v49 = vrot.slane %v800_v47, 2  ;;  %v818_v50 = vadd.f32 %v817_v48, %v816_v46 }
 0x3eb   : > { %v802_v51 = vadd.f32 %v801_v49, %v800_v47  ;;  %v819_v52 = vrot.slane %v818_v50, 2 }
 0x3ed   : > { %v820_v53 = vadd.f32 %v819_v52, %v818_v50  ;;  %v803_v54 = vrot.slane %v802_v51, 1 }
 0x3ef   : > { %v804_v55 = vadd.f32 %v803_v54, %v802_v51  ;;  %v821_v56 = vrot.slane %v820_v53, 1 }
 0x3f1   : > { %1044 = vpush %v804_v55  ;;  %v822_v57 = vadd.f32 %v821_v56, %v820_v53 }
 0x3f3   : > { %1046 = vpush %v822_v57 }
 0x422   : > { %s1045_s28 = spop %1044 }
 0x423   : > { %s806_s30 = ssub.f32 0.0, %s1045_s28 }
 0x424   : > { %s1047_s8 = spop %1046 }
 0x425   : > { %s824_s9 = ssub.f32 %s806_s30, %s1047_s8 }
 0x427   : > { %s827_s10 = smul.f32 0.5, %s824_s9 }
 0x429   : > { %s831_s12 = smul.f32 %s953_s27, %s827_s10  ;;  %836 = sst [smem:[#allocation8 + $0x1]] %s827_s10 }
 0x42b   : > { %s832_s13 = sadd.f32 %s831_s12, %s829_s11 }
 0x42d   : > { %838 = sst [smem:[#allocation8 + $0x2]] %s832_s13 }
 0x42e PF: > { %p1062_p9 = scmp.eq.s32.totalorder %s1230_s0, 1  ;;  %s1143_s16 = scalar_lea.hbm %s1363_s7, 16 }
 0x42f   : > { %p1144_p10 = scmp.ne.s32.totalorder %s1363_s7, %s1143_s16  ;;  %p1149_p13 = scmp.lt.u32.totalorder %s1143_s16, %s1363_s7 }
 0x431   : > { %p1145_p11 = pnand %p1144_p10, %p1062_p9 }
 0x433   : > { %p1146_p12 = pneg %p1145_p11 }
 0x435   : > { %p1151_p0 = pnand %p1149_p13, %p1146_p12 }
 0x437   : > { %1154 = shalt.err (!%p1151_p0)
}
 0x438   : > { %s1180_s21 = smov [#allocation8]  }
 0x439   : > { %1053 = dma.smem_to_hbm (%p1062_p9), %s1180_s21, 16, %s1363_s7, [#allocation6]  }
 0x43a   : > { %1166 = dma.done.wait (%p1062_p9), [#allocation6], 16  }
 0x43b   : > { %1168 = vsyncadd (%p1062_p9), [#allocation6], 4294967280 }
 0x43c   : > { %852 = sfence }
 0x43d PF: > { %s25_s29 = sadd.s32 1, %s1171_s29  }
 0x43e   : > { %p22_p1 = scmp.ge.s32.totalorder %s25_s29, 4  }
 0x440   :  { %24 = sbr.rel (!%p22_p1) target bundleno = 17 (0x11), region = 90 }
 0x447   :  { %858 = vsyncpa [#allocation6], 1 }
 0x448   :  { %860 = vsyncpa [#allocation6 + $0x1], 1 }
 0x449   :  { %861 = vsyncpa [#allocation7], 1 }
 0x44a   :  { %863 = vsyncpa [#allocation7 + $0x1], 1 }

</bundles_post_ra>
